<compile_context>
chip_gen: v5e
topology: v5e:2x2
jax: 0.10.0
libtpu: 0.0.40
codegen_flags: <defaults>
</compile_context>

<pallas_src>
import functools
import math

import jax
import jax.numpy as jnp
from jax.experimental import pallas as pl
from jax.experimental.pallas import tpu as pltpu


# ---------------------------------------------------------------------------
# In-kernel math helpers
# ---------------------------------------------------------------------------
def _erf_f32(x):
    """float32-precision erf (Abramowitz & Stegun 7.1.26, |err| < ~2e-7).

    The 1/(1+p|x|) goes through the EUP approximate reciprocal (free slot) and
    is refined with one Newton-Raphson step back to ~f32 accuracy, so this
    matches PyTorch's exact (erf-based) GELU to float32 working precision.
    """
    p = 0.3275911
    a1 = 0.254829592
    a2 = -0.284496736
    a3 = 1.421413741
    a4 = -1.453152027
    a5 = 1.061405429
    ax = jnp.abs(x)
    d = 1.0 + p * ax
    t = pl.reciprocal(d, approx=True)
    t = t * (2.0 - d * t)  # one Newton step -> full f32-accurate 1/d
    poly = ((((a5 * t + a4) * t + a3) * t + a2) * t + a1) * t
    y = 1.0 - poly * jnp.exp(-ax * ax)
    return jnp.where(x >= 0.0, y, -y)


def _gelu_exact(x):
    # PyTorch F.gelu(approximate='none'): 0.5 * x * (1 + erf(x / sqrt(2)))
    return 0.5 * x * (1.0 + _erf_f32(x * (1.0 / math.sqrt(2.0))))


def _mlp_head(pooled, w0_ref, b0_ref, w1_ref, b1_ref, out_dtype):
    h = jnp.dot(pooled, w0_ref[...],
                preferred_element_type=jnp.float32) + b0_ref[...]
    h = _gelu_exact(h)
    o = jnp.dot(h, w1_ref[...],
                preferred_element_type=jnp.float32) + b1_ref[...]
    return o.astype(out_dtype)


# ---------------------------------------------------------------------------
# Kernels
# ---------------------------------------------------------------------------
def encode_head_single_pass_kernel(x_ref, w0_ref, b0_ref, w1_ref, b1_ref,
                                   o_ref, *, inv_hw):
    # x_ref: (TB, C, HW) — the full spatial extent of this batch tile.
    # One contiguous HBM row per (b, c); no accumulator, no pl.when.
    pooled = jnp.sum(x_ref[...].astype(jnp.float32), axis=-1) * inv_hw  # (TB, C)
    o_ref[...] = _mlp_head(pooled, w0_ref, b0_ref, w1_ref, b1_ref, o_ref.dtype)


def encode_head_chunked_kernel(x_ref, w0_ref, b0_ref, w1_ref, b1_ref, o_ref,
                               acc_ref, *, inv_hw):
    # x_ref  : (TB, C, HW_CHUNK) current spatial chunk of the current B tile
    # acc_ref: (TB, C) f32 running spatial sum, persists across the k axis
    k = pl.program_id(1)

    @pl.when(k == 0)
    def _init():
        acc_ref[...] = jnp.zeros_like(acc_ref)

    # adaptive_avg_pool2d([1,1]) == mean over H*W; accumulate partial sums in f32.
    acc_ref[...] += jnp.sum(x_ref[...].astype(jnp.float32), axis=-1)

    @pl.when(k == pl.num_programs(1) - 1)
    def _finalize():
        pooled = acc_ref[...] * inv_hw                                 # (TB, C)
        o_ref[...] = _mlp_head(pooled, w0_ref, b0_ref, w1_ref, b1_ref,
                               o_ref.dtype)


# ---------------------------------------------------------------------------
# VMEM / generation-aware budgeting
# ---------------------------------------------------------------------------
def _physical_vmem_bytes():
    """Best-effort per-TensorCore VMEM capacity (bytes)."""
    kind = ""
    try:
        kind = jax.devices()[0].device_kind.lower()
    except Exception:
        pass
    if "v7" in kind or "7x" in kind:
        return 64 << 20                      # v7x: 64 MiB / TensorCore
    if any(g in kind for g in ("v6", "v5", "v4", "trillium")):
        return 128 << 20                     # v4/v5e/v5p/v6e: 128 MiB
    if any(g in kind for g in ("v3", "v2")):
        return 16 << 20
    try:
        info = pltpu.get_tpu_info()
        for attr in ("vmem_capacity_bytes", "vmem_bytes", "vmem_size_bytes"):
            v = getattr(info, attr, None)
            if v:
                return int(v)
    except Exception:
        pass
    return 64 << 20                          # unknown: assume smallest modern gen


def _round_up(x, m):
    return -(-x // m) * m


def _padded_bytes_2d(rows, cols, itemsize):
    """VMEM footprint of a (rows, cols) tile incl. sublane/lane padding."""
    sub = 8 * max(1, 4 // max(1, itemsize))  # rows per 32-bit sublane group
    return _round_up(rows, sub) * _round_up(cols, 128) * itemsize


def _select_tiles(B, C, HW, x_itemsize, resident_param_bytes, out_f,
                  out_itemsize, vmem_budget_bytes, max_x_block_bytes):
    """Jointly pick (batch_tile, hw_chunk) so everything fits the VMEM budget."""

    def x_block_bytes(tb, hw):
        return tb * _padded_bytes_2d(C, hw, x_itemsize)

    def total_bytes(tb, hw, chunked):
        total = 2 * x_block_bytes(tb, hw)                         # x double-buffered
        total += resident_param_bytes                             # weights + biases
        total += 2 * _padded_bytes_2d(tb, out_f, out_itemsize)    # output buffers
        if chunked:
            total += _padded_bytes_2d(tb, C, 4)                   # f32 accumulator
        return total

    # Batch-tile candidates: the full B is always legal; otherwise multiples of
    # 8 dividing B (the (8,128) rule applies to the (tb, out_f) output block).
    cands = sorted({d for d in range(8, B + 1, 8) if B % d == 0} | {B},
                   reverse=True)
    if B >= 16:
        # Keep >= 2 batch tiles so the parallel axis can shard across both
        # v7x TensorCores (harmless on single-TC generations).
        small = [d for d in cands if d <= B // 2]
        if small:
            cands = small

    # Pass 1: prefer the degenerate nk == 1 path (fully contiguous row DMA,
    # no accumulator, no per-chunk overhead), shrinking tb until it fits.
    for tb in cands:
        if (x_block_bytes(tb, HW) <= max_x_block_bytes
                and total_bytes(tb, HW, chunked=False) <= vmem_budget_bytes):
            return tb, HW

    # Pass 2: chunk the spatial axis.  Smallest legal batch tile so the budget
    # goes to the lane dimension (longer contiguous HBM DMA segments).
    tb = min(cands)
    if HW % 128 != 0:
        return tb, HW            # only the full extent is a legal lane block

    # Prefer multiples of 512 lanes so the per-chunk cross-lane reduce stays
    # amortized (XLU slot pressure at v7x's 3.2 TB/s); else multiples of 128.
    for step in (512, 128):
        best = 0
        hw = step
        while hw <= HW:
            if (HW % hw == 0
                    and x_block_bytes(tb, hw) <= max_x_block_bytes
                    and total_bytes(tb, hw, chunked=True) <= vmem_budget_bytes):
                best = hw
            hw += step
        if best:
            return tb, best

    # Nothing fits the budget: take the smallest legal chunk and let the
    # compiler do its best.
    # TODO(synk): also block the channel axis for extreme C where even a
    # (8, C, 128) tile exceeds per-TC VMEM.
    return tb, 128


# ---------------------------------------------------------------------------
# Wrapper
# ---------------------------------------------------------------------------
def encode_head(x_nchw, w0, b0, w1, b1, *, batch_tile=None, hw_chunk=None,
                vmem_limit_bytes=None, single_buffer_weights=True):
    """x_nchw: (B, C, H, W); w0: (hidden, C); b0: (hidden,); w1: (out, hidden); b1: (out,)."""
    B, C, H, W = x_nchw.shape
    HW = H * W
    hidden = w0.shape[0]
    out_f = w1.shape[0]
    assert w0.shape == (hidden, C) and w1.shape == (out_f, hidden)
    assert b0.shape == (hidden,) and b1.shape == (out_f,)

    x_itemsize = jnp.dtype(x_nchw.dtype).itemsize
    out_itemsize = x_itemsize
    wbuf = 1 if single_buffer_weights else 2
    resident_param_bytes = wbuf * (
        _padded_bytes_2d(C, hidden, jnp.dtype(w0.dtype).itemsize)
        + _padded_bytes_2d(1, hidden, jnp.dtype(b0.dtype).itemsize)
        + _padded_bytes_2d(hidden, out_f, jnp.dtype(w1.dtype).itemsize)
        + _padded_bytes_2d(1, out_f, jnp.dtype(b1.dtype).itemsize))

    # ---- per-generation VMEM budget ----------------------------------------
    phys = _physical_vmem_bytes()
    if vmem_limit_bytes is None:
        # ~96 MiB of the 128 MiB on v4/v5e/v6e, ~60 MiB of the 64 MiB on v7x.
        vmem_limit_bytes = max(min(phys - (4 << 20), 96 << 20), 8 << 20)
    vmem_limit_bytes = int(vmem_limit_bytes)
    usable = vmem_limit_bytes - (2 << 20)          # headroom for compiler scratch
    max_x_block = max(min(32 << 20, usable // 3), 1 << 20)

    auto_tb, auto_hw = _select_tiles(B, C, HW, x_itemsize, resident_param_bytes,
                                     out_f, out_itemsize, usable, max_x_block)
    tb = int(batch_tile) if batch_tile is not None else auto_tb
    hw_chunk = int(hw_chunk) if hw_chunk is not None else auto_hw
    assert B % tb == 0, "batch_tile must divide B"
    assert HW % hw_chunk == 0, "hw_chunk must divide H*W"

    nb = B // tb
    nk = HW // hw_chunk

    x3 = x_nchw.reshape(B, C, HW)                  # pure view to (B, C, HW)
    w0_t = w0.T                                    # (C, hidden)
    w1_t = w1.T                                    # (hidden, out)
    b0_2 = b0.reshape(1, hidden)
    b1_2 = b1.reshape(1, out_f)
    inv_hw = 1.0 / HW

    cost = pl.CostEstimate(
        flops=B * C * HW + 2 * B * (C * hidden + hidden * out_f),
        transcendentals=B * hidden,
        bytes_accessed=(x3.size * x_itemsize
                        + (w0.size + b0.size) * jnp.dtype(w0.dtype).itemsize
                        + (w1.size + b1.size) * jnp.dtype(w1.dtype).itemsize
                        + B * out_f * out_itemsize))

    def build(grid, use_buffered_weights):
        grid_rank = len(grid)

        def _resident_spec(shape):
            # Constant block index -> stays in VMEM across the whole grid.
            if grid_rank == 1:
                idx = lambda i: (0,) * len(shape)
            else:
                idx = lambda i, k: (0,) * len(shape)
            if use_buffered_weights:
                # Single buffer: the index never changes, so the default second
                # (double) buffer is wasted VMEM — matters most on v7x (64 MiB).
                return pl.BlockSpec(shape, idx, pipeline_mode=pl.Buffered(1))
            return pl.BlockSpec(shape, idx)

        w_specs = [_resident_spec((C, hidden)), _resident_spec((1, hidden)),
                   _resident_spec((hidden, out_f)), _resident_spec((1, out_f))]

        if grid_rank == 1:
            # Single-pass: full spatial row per batch tile.
            x_spec = pl.BlockSpec((tb, C, HW), lambda i: (i, 0, 0))
            out_spec = pl.BlockSpec((tb, out_f), lambda i: (i, 0))
            scratch = []
            kernel = functools.partial(encode_head_single_pass_kernel,
                                       inv_hw=inv_hw)
            semantics = ("parallel",)
        else:
            # Chunked spatial reduction (reduction axis last in the grid).
            x_spec = pl.BlockSpec((tb, C, hw_chunk), lambda i, k: (i, 0, k))
            out_spec = pl.BlockSpec((tb, out_f), lambda i, k: (i, 0))
            scratch = [pltpu.VMEM((tb, C), jnp.float32)]
            kernel = functools.partial(encode_head_chunked_kernel,
                                       inv_hw=inv_hw)
            semantics = ("parallel", "arbitrary")

        grid_spec = pltpu.PrefetchScalarGridSpec(
            num_scalar_prefetch=0,
            grid=grid,
            in_specs=[x_spec] + w_specs,
            out_specs=out_spec,
            scratch_shapes=scratch)

        return pl.pallas_call(
            kernel,
            out_shape=jax.ShapeDtypeStruct((B, out_f), x_nchw.dtype),
            grid_spec=grid_spec,
            compiler_params=pltpu.CompilerParams(
                dimension_semantics=semantics,
                vmem_limit_bytes=vmem_limit_bytes),
            cost_estimate=cost,
        )

    grid = (nb,) if nk == 1 else (nb, nk)

    use_buffered = single_buffer_weights and hasattr(pl, "Buffered")
    if use_buffered:
        try:
            out = build(grid, True)(x3, w0_t, b0_2, w1_t, b1_2)
            return jax.block_until_ready(out)
        except Exception:
            # Installed JAX rejects BlockSpec.pipeline_mode / Buffered(1):
            # fall back to the default (double-buffered) weight residency.
            pass
    return build(grid, False)(x3, w0_t, b0_2, w1_t, b1_2)


# ---------------------------------------------------------------------------
# Pure-JAX reference (for a sanity check)
# ---------------------------------------------------------------------------
def encode_head_ref(x_nchw, w0, b0, w1, b1):
    y = jnp.mean(x_nchw, axis=(2, 3))              # adaptive_avg_pool2d -> (B, C)
    y = y @ w0.T + b0                              # linear0
    y = jax.nn.gelu(y, approximate=False)          # exact (erf) GELU
    y = y @ w1.T + b1                              # linear1
    return y


if __name__ == "__main__":
    B, C, H, W = 2, 4, 16, 16          # in_features = C = 4
    hidden_features = 32
    out_features = 16

    key = jax.random.PRNGKey(0)
    kx, kw0, kb0, kw1, kb1 = jax.random.split(key, 5)

    x = jax.random.normal(kx, (B, C, H, W), dtype=jnp.float32)

    # Deterministic synthetic parameters (PyTorch Linear shapes: (out, in)).
    lim0 = 1.0 / math.sqrt(C)
    lim1 = 1.0 / math.sqrt(hidden_features)
    w0 = jax.random.uniform(kw0, (hidden_features, C), jnp.float32, -lim0, lim0)
    b0 = jax.random.uniform(kb0, (hidden_features,), jnp.float32, -lim0, lim0)
    w1 = jax.random.uniform(kw1, (out_features, hidden_features), jnp.float32,
                            -lim1, lim1)
    b1 = jax.random.uniform(kb1, (out_features,), jnp.float32, -lim1, lim1)

    ref = encode_head_ref(x, w0, b0, w1, b1)

    # Auto-tiled path: picks the single-pass (nk == 1) kernel at this size.
    out_auto = jax.block_until_ready(encode_head(x, w0, b0, w1, b1))
    # Forced 2-chunk spatial reduction: exercises the accumulator kernel.
    out_tiled = jax.block_until_ready(encode_head(x, w0, b0, w1, b1,
                                                  hw_chunk=128))
    # Default (double-buffered) weight residency path.
    out_dbuf = jax.block_until_ready(
        encode_head(x, w0, b0, w1, b1, single_buffer_weights=False))

    assert out_auto.shape == (B, out_features)
    assert jnp.allclose(out_auto, ref, atol=1e-3, rtol=1e-3)
    assert jnp.allclose(out_tiled, ref, atol=1e-3, rtol=1e-3)
    assert jnp.allclose(out_dbuf, ref, atol=1e-3, rtol=1e-3)

    print("KERNEL_OK")
</pallas_src>

<mosaic_0001>
module attributes {stable_mosaic.version = 11 : i64} {
  func.func @encode_head_single_pass_kernel(%arg0: i32, %arg1: memref<2x4x256xf32, #tpu.memory_space<vmem>>, %arg2: memref<4x32xf32, #tpu.memory_space<vmem>>, %arg3: memref<1x32xf32, #tpu.memory_space<vmem>>, %arg4: memref<32x16xf32, #tpu.memory_space<vmem>>, %arg5: memref<1x16xf32, #tpu.memory_space<vmem>>, %arg6: memref<2x16xf32, #tpu.memory_space<vmem>>) attributes {dimension_semantics = [#tpu.dimension_semantics<parallel>], iteration_bounds = array<i64: 1>, scalar_prefetch = 0 : i64, scratch_operands = 0 : i64, tpu.core_type = #tpu.core_type<tc>, window_params = [{transform_indices = @transform_0, window_bounds = array<i64: 2, 4, 256>}, {pipeline_mode = #tpu.pipeline_mode<synchronous>, transform_indices = @transform_1, window_bounds = array<i64: 4, 32>}, {pipeline_mode = #tpu.pipeline_mode<synchronous>, transform_indices = @transform_2, window_bounds = array<i64: 1, 32>}, {pipeline_mode = #tpu.pipeline_mode<synchronous>, transform_indices = @transform_3, window_bounds = array<i64: 32, 16>}, {pipeline_mode = #tpu.pipeline_mode<synchronous>, transform_indices = @transform_4, window_bounds = array<i64: 1, 16>}, {transform_indices = @transform_5, window_bounds = array<i64: 2, 16>}]} {
    %c0 = arith.constant 0 : index
    %c0_0 = arith.constant 0 : index
    %c0_1 = arith.constant 0 : index
    %0 = vector.load %arg1[%c0, %c0_0, %c0_1] : memref<2x4x256xf32, #tpu.memory_space<vmem>>, vector<2x4x256xf32>
    %cst = arith.constant dense<0.000000e+00> : vector<2x4xf32>
    %1 = vector.multi_reduction <add>, %0, %cst [2] : vector<2x4x256xf32> to vector<2x4xf32>
    %cst_2 = arith.constant 3.906250e-03 : f32
    %2 = vector.broadcast %cst_2 : f32 to vector<2x4xf32>
    %3 = arith.mulf %1, %2 : vector<2x4xf32>
    %c0_3 = arith.constant 0 : index
    %c0_4 = arith.constant 0 : index
    %4 = vector.load %arg2[%c0_3, %c0_4] : memref<4x32xf32, #tpu.memory_space<vmem>>, vector<4x32xf32>
    %cst_5 = arith.constant dense<0.000000e+00> : vector<2x32xf32>
    %5 = tpu.matmul %3, %4, %cst_5 {dimension_numbers = #tpu.dot_dimension_numbers<[1], [0], [0], [1], [0, 0, 1, 1], [], []>} : vector<2x4xf32>, vector<4x32xf32>, vector<2x32xf32> -> vector<2x32xf32>
    %c0_6 = arith.constant 0 : index
    %c0_7 = arith.constant 0 : index
    %6 = vector.load %arg3[%c0_6, %c0_7] : memref<1x32xf32, #tpu.memory_space<vmem>>, vector<1x32xf32>
    %7 = vector.broadcast %6 : vector<1x32xf32> to vector<2x32xf32>
    %8 = arith.addf %5, %7 : vector<2x32xf32>
    %cst_8 = arith.constant 5.000000e-01 : f32
    %9 = vector.broadcast %cst_8 : f32 to vector<2x32xf32>
    %10 = arith.mulf %9, %8 : vector<2x32xf32>
    %cst_9 = arith.constant 0.707106769 : f32
    %11 = vector.broadcast %cst_9 : f32 to vector<2x32xf32>
    %12 = arith.mulf %8, %11 : vector<2x32xf32>
    %13 = math.absf %12 : vector<2x32xf32>
    %cst_10 = arith.constant 0.327591091 : f32
    %14 = vector.broadcast %cst_10 : f32 to vector<2x32xf32>
    %15 = arith.mulf %14, %13 : vector<2x32xf32>
    %cst_11 = arith.constant 1.000000e+00 : f32
    %16 = vector.broadcast %cst_11 : f32 to vector<2x32xf32>
    %17 = arith.addf %16, %15 : vector<2x32xf32>
    %18 = tpu.reciprocal %17 {approx = true} : vector<2x32xf32> -> vector<2x32xf32>
    %19 = arith.mulf %17, %18 : vector<2x32xf32>
    %cst_12 = arith.constant 2.000000e+00 : f32
    %20 = vector.broadcast %cst_12 : f32 to vector<2x32xf32>
    %21 = arith.subf %20, %19 : vector<2x32xf32>
    %22 = arith.mulf %18, %21 : vector<2x32xf32>
    %cst_13 = arith.constant 1.06140542 : f32
    %23 = vector.broadcast %cst_13 : f32 to vector<2x32xf32>
    %24 = arith.mulf %23, %22 : vector<2x32xf32>
    %cst_14 = arith.constant -1.45315206 : f32
    %25 = vector.broadcast %cst_14 : f32 to vector<2x32xf32>
    %26 = arith.addf %24, %25 : vector<2x32xf32>
    %27 = arith.mulf %26, %22 : vector<2x32xf32>
    %cst_15 = arith.constant 1.42141378 : f32
    %28 = vector.broadcast %cst_15 : f32 to vector<2x32xf32>
    %29 = arith.addf %27, %28 : vector<2x32xf32>
    %30 = arith.mulf %29, %22 : vector<2x32xf32>
    %cst_16 = arith.constant -0.284496725 : f32
    %31 = vector.broadcast %cst_16 : f32 to vector<2x32xf32>
    %32 = arith.addf %30, %31 : vector<2x32xf32>
    %33 = arith.mulf %32, %22 : vector<2x32xf32>
    %cst_17 = arith.constant 0.254829586 : f32
    %34 = vector.broadcast %cst_17 : f32 to vector<2x32xf32>
    %35 = arith.addf %33, %34 : vector<2x32xf32>
    %36 = arith.mulf %35, %22 : vector<2x32xf32>
    %cst_18 = arith.constant 0.000000e+00 : f32
    %37 = vector.broadcast %cst_18 : f32 to vector<2x32xf32>
    %38 = arith.subf %37, %13 : vector<2x32xf32>
    %39 = arith.mulf %38, %13 : vector<2x32xf32>
    %40 = math.exp %39 : vector<2x32xf32>
    %41 = arith.mulf %36, %40 : vector<2x32xf32>
    %cst_19 = arith.constant 1.000000e+00 : f32
    %42 = vector.broadcast %cst_19 : f32 to vector<2x32xf32>
    %43 = arith.subf %42, %41 : vector<2x32xf32>
    %cst_20 = arith.constant 0.000000e+00 : f32
    %44 = vector.broadcast %cst_20 : f32 to vector<2x32xf32>
    %45 = arith.cmpf oge, %12, %44 : vector<2x32xf32>
    %cst_21 = arith.constant 0.000000e+00 : f32
    %46 = vector.broadcast %cst_21 : f32 to vector<2x32xf32>
    %47 = arith.subf %46, %43 : vector<2x32xf32>
    %48 = arith.select %45, %43, %47 : vector<2x32xi1>, vector<2x32xf32>
    %cst_22 = arith.constant 1.000000e+00 : f32
    %49 = vector.broadcast %cst_22 : f32 to vector<2x32xf32>
    %50 = arith.addf %49, %48 : vector<2x32xf32>
    %51 = arith.mulf %10, %50 : vector<2x32xf32>
    %c0_23 = arith.constant 0 : index
    %c0_24 = arith.constant 0 : index
    %52 = vector.load %arg4[%c0_23, %c0_24] : memref<32x16xf32, #tpu.memory_space<vmem>>, vector<32x16xf32>
    %cst_25 = arith.constant dense<0.000000e+00> : vector<2x16xf32>
    %53 = tpu.matmul %51, %52, %cst_25 {dimension_numbers = #tpu.dot_dimension_numbers<[1], [0], [0], [1], [0, 0, 1, 1], [], []>} : vector<2x32xf32>, vector<32x16xf32>, vector<2x16xf32> -> vector<2x16xf32>
    %c0_26 = arith.constant 0 : index
    %c0_27 = arith.constant 0 : index
    %54 = vector.load %arg5[%c0_26, %c0_27] : memref<1x16xf32, #tpu.memory_space<vmem>>, vector<1x16xf32>
    %55 = vector.broadcast %54 : vector<1x16xf32> to vector<2x16xf32>
    %56 = arith.addf %53, %55 : vector<2x16xf32>
    %c0_28 = arith.constant 0 : index
    %c0_29 = arith.constant 0 : index
    %57 = vector.load %arg6[%c0_28, %c0_29] : memref<2x16xf32, #tpu.memory_space<vmem>>, vector<2x16xf32>
    tpu.vector_store %arg6[%c0_28, %c0_29], %56 {strides = array<i32>} : memref<2x16xf32, #tpu.memory_space<vmem>>, vector<2x16xf32>,
    return
  }
  func.func @transform_0(%arg0: i32) -> (i32, i32, i32) {
    %c0_i32 = arith.constant 0 : i32
    %c0_i32_0 = arith.constant 0 : i32
    %c0_i32_1 = arith.constant 0 : i32
    return %arg0, %c0_i32, %c0_i32_0 : i32, i32, i32
  }
  func.func @transform_1(%arg0: i32) -> (i32, i32) {
    %c0_i32 = arith.constant 0 : i32
    %c0_i32_0 = arith.constant 0 : i32
    %c0_i32_1 = arith.constant 0 : i32
    return %c0_i32, %c0_i32_0 : i32, i32
  }
  func.func @transform_2(%arg0: i32) -> (i32, i32) {
    %c0_i32 = arith.constant 0 : i32
    %c0_i32_0 = arith.constant 0 : i32
    %c0_i32_1 = arith.constant 0 : i32
    return %c0_i32, %c0_i32_0 : i32, i32
  }
  func.func @transform_3(%arg0: i32) -> (i32, i32) {
    %c0_i32 = arith.constant 0 : i32
    %c0_i32_0 = arith.constant 0 : i32
    %c0_i32_1 = arith.constant 0 : i32
    return %c0_i32, %c0_i32_0 : i32, i32
  }
  func.func @transform_4(%arg0: i32) -> (i32, i32) {
    %c0_i32 = arith.constant 0 : i32
    %c0_i32_0 = arith.constant 0 : i32
    %c0_i32_1 = arith.constant 0 : i32
    return %c0_i32, %c0_i32_0 : i32, i32
  }
  func.func @transform_5(%arg0: i32) -> (i32, i32) {
    %c0_i32 = arith.constant 0 : i32
    %c0_i32_0 = arith.constant 0 : i32
    return %arg0, %c0_i32 : i32, i32
  }
}

module attributes {stable_mosaic.version = 11 : i64} {
  func.func @encode_head_single_pass_kernel(%arg0: i32, %arg1: memref<2x4x256xf32, #tpu.memory_space<vmem>>, %arg2: memref<4x32xf32, #tpu.memory_space<vmem>>, %arg3: memref<1x32xf32, #tpu.memory_space<vmem>>, %arg4: memref<32x16xf32, #tpu.memory_space<vmem>>, %arg5: memref<1x16xf32, #tpu.memory_space<vmem>>, %arg6: memref<2x16xf32, #tpu.memory_space<vmem>>) attributes {dimension_semantics = [#tpu.dimension_semantics<parallel>], iteration_bounds = array<i64: 1>, scalar_prefetch = 0 : i64, scratch_operands = 0 : i64, tpu.core_type = #tpu.core_type<tc>, window_params = [{transform_indices = @transform_0, window_bounds = array<i64: 2, 4, 256>}, {pipeline_mode = #tpu.pipeline_mode<synchronous>, transform_indices = @transform_1, window_bounds = array<i64: 4, 32>}, {pipeline_mode = #tpu.pipeline_mode<synchronous>, transform_indices = @transform_2, window_bounds = array<i64: 1, 32>}, {pipeline_mode = #tpu.pipeline_mode<synchronous>, transform_indices = @transform_3, window_bounds = array<i64: 32, 16>}, {pipeline_mode = #tpu.pipeline_mode<synchronous>, transform_indices = @transform_4, window_bounds = array<i64: 1, 16>}, {transform_indices = @transform_5, window_bounds = array<i64: 2, 16>}]} {
    %c0 = arith.constant 0 : index
    %c0_0 = arith.constant 0 : index
    %c0_1 = arith.constant 0 : index
    %0 = vector.load %arg1[%c0, %c0_0, %c0_1] : memref<2x4x256xf32, #tpu.memory_space<vmem>>, vector<2x4x256xf32>
    %cst = arith.constant dense<0.000000e+00> : vector<2x4xf32>
    %1 = vector.multi_reduction <add>, %0, %cst [2] : vector<2x4x256xf32> to vector<2x4xf32>
    %cst_2 = arith.constant 3.906250e-03 : f32
    %2 = vector.broadcast %cst_2 : f32 to vector<2x4xf32>
    %3 = arith.mulf %1, %2 : vector<2x4xf32>
    %c0_3 = arith.constant 0 : index
    %c0_4 = arith.constant 0 : index
    %4 = vector.load %arg2[%c0_3, %c0_4] : memref<4x32xf32, #tpu.memory_space<vmem>>, vector<4x32xf32>
    %cst_5 = arith.constant dense<0.000000e+00> : vector<2x32xf32>
    %5 = tpu.matmul %3, %4, %cst_5 {dimension_numbers = #tpu.dot_dimension_numbers<[1], [0], [0], [1], [0, 0, 1, 1], [], []>} : vector<2x4xf32>, vector<4x32xf32>, vector<2x32xf32> -> vector<2x32xf32>
    %c0_6 = arith.constant 0 : index
    %c0_7 = arith.constant 0 : index
    %6 = vector.load %arg3[%c0_6, %c0_7] : memref<1x32xf32, #tpu.memory_space<vmem>>, vector<1x32xf32>
    %7 = vector.broadcast %6 : vector<1x32xf32> to vector<2x32xf32>
    %8 = arith.addf %5, %7 : vector<2x32xf32>
    %cst_8 = arith.constant 5.000000e-01 : f32
    %9 = vector.broadcast %cst_8 : f32 to vector<2x32xf32>
    %10 = arith.mulf %9, %8 : vector<2x32xf32>
    %cst_9 = arith.constant 0.707106769 : f32
    %11 = vector.broadcast %cst_9 : f32 to vector<2x32xf32>
    %12 = arith.mulf %8, %11 : vector<2x32xf32>
    %13 = math.absf %12 : vector<2x32xf32>
    %cst_10 = arith.constant 0.327591091 : f32
    %14 = vector.broadcast %cst_10 : f32 to vector<2x32xf32>
    %15 = arith.mulf %14, %13 : vector<2x32xf32>
    %cst_11 = arith.constant 1.000000e+00 : f32
    %16 = vector.broadcast %cst_11 : f32 to vector<2x32xf32>
    %17 = arith.addf %16, %15 : vector<2x32xf32>
    %18 = tpu.reciprocal %17 {approx = true} : vector<2x32xf32> -> vector<2x32xf32>
    %19 = arith.mulf %17, %18 : vector<2x32xf32>
    %cst_12 = arith.constant 2.000000e+00 : f32
    %20 = vector.broadcast %cst_12 : f32 to vector<2x32xf32>
    %21 = arith.subf %20, %19 : vector<2x32xf32>
    %22 = arith.mulf %18, %21 : vector<2x32xf32>
    %cst_13 = arith.constant 1.06140542 : f32
    %23 = vector.broadcast %cst_13 : f32 to vector<2x32xf32>
    %24 = arith.mulf %23, %22 : vector<2x32xf32>
    %cst_14 = arith.constant -1.45315206 : f32
    %25 = vector.broadcast %cst_14 : f32 to vector<2x32xf32>
    %26 = arith.addf %24, %25 : vector<2x32xf32>
    %27 = arith.mulf %26, %22 : vector<2x32xf32>
    %cst_15 = arith.constant 1.42141378 : f32
    %28 = vector.broadcast %cst_15 : f32 to vector<2x32xf32>
    %29 = arith.addf %27, %28 : vector<2x32xf32>
    %30 = arith.mulf %29, %22 : vector<2x32xf32>
    %cst_16 = arith.constant -0.284496725 : f32
    %31 = vector.broadcast %cst_16 : f32 to vector<2x32xf32>
    %32 = arith.addf %30, %31 : vector<2x32xf32>
    %33 = arith.mulf %32, %22 : vector<2x32xf32>
    %cst_17 = arith.constant 0.254829586 : f32
    %34 = vector.broadcast %cst_17 : f32 to vector<2x32xf32>
    %35 = arith.addf %33, %34 : vector<2x32xf32>
    %36 = arith.mulf %35, %22 : vector<2x32xf32>
    %cst_18 = arith.constant 0.000000e+00 : f32
    %37 = vector.broadcast %cst_18 : f32 to vector<2x32xf32>
    %38 = arith.subf %37, %13 : vector<2x32xf32>
    %39 = arith.mulf %38, %13 : vector<2x32xf32>
    %40 = math.exp %39 : vector<2x32xf32>
    %41 = arith.mulf %36, %40 : vector<2x32xf32>
    %cst_19 = arith.constant 1.000000e+00 : f32
    %42 = vector.broadcast %cst_19 : f32 to vector<2x32xf32>
    %43 = arith.subf %42, %41 : vector<2x32xf32>
    %cst_20 = arith.constant 0.000000e+00 : f32
    %44 = vector.broadcast %cst_20 : f32 to vector<2x32xf32>
    %45 = arith.cmpf oge, %12, %44 : vector<2x32xf32>
    %cst_21 = arith.constant 0.000000e+00 : f32
    %46 = vector.broadcast %cst_21 : f32 to vector<2x32xf32>
    %47 = arith.subf %46, %43 : vector<2x32xf32>
    %48 = arith.select %45, %43, %47 : vector<2x32xi1>, vector<2x32xf32>
    %cst_22 = arith.constant 1.000000e+00 : f32
    %49 = vector.broadcast %cst_22 : f32 to vector<2x32xf32>
    %50 = arith.addf %49, %48 : vector<2x32xf32>
    %51 = arith.mulf %10, %50 : vector<2x32xf32>
    %c0_23 = arith.constant 0 : index
    %c0_24 = arith.constant 0 : index
    %52 = vector.load %arg4[%c0_23, %c0_24] : memref<32x16xf32, #tpu.memory_space<vmem>>, vector<32x16xf32>
    %cst_25 = arith.constant dense<0.000000e+00> : vector<2x16xf32>
    %53 = tpu.matmul %51, %52, %cst_25 {dimension_numbers = #tpu.dot_dimension_numbers<[1], [0], [0], [1], [0, 0, 1, 1], [], []>} : vector<2x32xf32>, vector<32x16xf32>, vector<2x16xf32> -> vector<2x16xf32>
    %c0_26 = arith.constant 0 : index
    %c0_27 = arith.constant 0 : index
    %54 = vector.load %arg5[%c0_26, %c0_27] : memref<1x16xf32, #tpu.memory_space<vmem>>, vector<1x16xf32>
    %55 = vector.broadcast %54 : vector<1x16xf32> to vector<2x16xf32>
    %56 = arith.addf %53, %55 : vector<2x16xf32>
    %c0_28 = arith.constant 0 : index
    %c0_29 = arith.constant 0 : index
    %57 = vector.load %arg6[%c0_28, %c0_29] : memref<2x16xf32, #tpu.memory_space<vmem>>, vector<2x16xf32>
    tpu.vector_store %arg6[%c0_28, %c0_29], %56 {strides = array<i32>} : memref<2x16xf32, #tpu.memory_space<vmem>>, vector<2x16xf32>,
    return
  }
  func.func @transform_0(%arg0: i32) -> (i32, i32, i32) {
    %c0_i32 = arith.constant 0 : i32
    %c0_i32_0 = arith.constant 0 : i32
    %c0_i32_1 = arith.constant 0 : i32
    return %arg0, %c0_i32, %c0_i32_0 : i32, i32, i32
  }
  func.func @transform_1(%arg0: i32) -> (i32, i32) {
    %c0_i32 = arith.constant 0 : i32
    %c0_i32_0 = arith.constant 0 : i32
    %c0_i32_1 = arith.constant 0 : i32
    return %c0_i32, %c0_i32_0 : i32, i32
  }
  func.func @transform_2(%arg0: i32) -> (i32, i32) {
    %c0_i32 = arith.constant 0 : i32
    %c0_i32_0 = arith.constant 0 : i32
    %c0_i32_1 = arith.constant 0 : i32
    return %c0_i32, %c0_i32_0 : i32, i32
  }
  func.func @transform_3(%arg0: i32) -> (i32, i32) {
    %c0_i32 = arith.constant 0 : i32
    %c0_i32_0 = arith.constant 0 : i32
    %c0_i32_1 = arith.constant 0 : i32
    return %c0_i32, %c0_i32_0 : i32, i32
  }
  func.func @transform_4(%arg0: i32) -> (i32, i32) {
    %c0_i32 = arith.constant 0 : i32
    %c0_i32_0 = arith.constant 0 : i32
    %c0_i32_1 = arith.constant 0 : i32
    return %c0_i32, %c0_i32_0 : i32, i32
  }
  func.func @transform_5(%arg0: i32) -> (i32, i32) {
    %c0_i32 = arith.constant 0 : i32
    %c0_i32_0 = arith.constant 0 : i32
    return %arg0, %c0_i32 : i32, i32
  }
}

</mosaic_0001>

<bundles_post_ra>
// kernel: tpu_custom_call.1
= control target key start
LH: loop header
LB: loop body
LE: loop exit
PB: predicated region body
PF: predicated region fallthrough
CT: control target
= control target key end

     0   :  { %s264_s0 = inlined_call_operand.vmem [shape: f32[2,4,256], index: 0, kind: input, shape index: {}]   ;;  %s265_s1 = inlined_call_operand.vmem [shape: f32[4,32], index: 1, kind: input, shape index: {}]   ;;  %s266_s2 = inlined_call_operand.vmem [shape: f32[1,32], index: 2, kind: input, shape index: {}]   ;;  %s267_s3 = inlined_call_operand.vmem [shape: f32[32,16], index: 3, kind: input, shape index: {}]   ;;  %s268_s4 = inlined_call_operand.vmem [shape: f32[1,16], index: 4, kind: input, shape index: {}]   ;;  %s269_s5 = inlined_call_operand.hbm [shape: f32[2,16], index: 5, kind: output, shape index: {}]  }
   0x1   :  { %v21_v0 = vld [vmem:[%s264_s0] sm:$0xff]  ;;  %v22_v1 = vld [vmem:[%s264_s0 + $0x8] sm:$0xff] }
   0x2   :  { %25 = vst [vmem:[#allocation1] ss:$2 sm:$0xff] %v21_v0 }
   0x3   :  { %10 = vsyncpa [#allocation3], 0  ;;  %29 = vst [vmem:[#allocation1 + $0x10] ss:$2 sm:$0xff] %v22_v1  ;;  %vm36_vm0 = vcmask 1043456   ;;  %v56_v14 = vlaneseq  ;;  %vm60_vm1 = vcmask 1041409  }
   0x4   :  { %v49_v12 = vld [vmem:[%s265_s1] sm:$0xf]  ;;  %vm62_vm2 = vcmask 31744   ;;  %v120_v22 = vld [vmem:[%s267_s3 + $0x18] sm:$0xff]  ;;  %v119_v23 = vld [vmem:[%s267_s3 + $0x10] sm:$0xff]  ;;  %vm125_vm4 = vcmask 261120  }
   0x5   :  { %167 = vmatpush.msk.msra.mxu0 %vm36_vm0, %v49_v12  ;;  %v57_v15 = vand.u32 127, %v56_v14  ;;  %141 = vmatpush.msra.mxu1 %v120_v22  ;;  %v118_v24 = vld [vmem:[%s267_s3 + $0x8] sm:$0xff]  ;;  %v117_v25 = vld [vmem:[%s267_s3] sm:$0xff]  ;;  %s203_s7 = smov [#allocation2]   ;;  %s158_s11 = sshll.u32 %s269_s5, 4  ;;  %vm149_vm5 = vcmask 123904   ;;  %s159_s11 = int_to_ptr.hbm [resolvable:$true] %s158_s11 }
   0x6   :  { %v171_v26 = vld [vmem:[%s266_s2] ss:$0 sm:$0xff]  ;;  %s156_s8 = sshll.u32 %s203_s7, 4  ;;  %s157_s8 = int_to_ptr.vmem [resolvable:$true] %s156_s8 }
   0x7   :  { %142 = vmatpush.msra.mxu1 %v119_v23  ;;  %v172_v57 = vld [vmem:[%s268_s4] ss:$0 sm:$0xff] }
   0x9   :  { %v26_v2 = vld.sshfl [vmem:[#allocation1] sm:$0xff pattern:$0x75316420]  ;;  %v27_v3 = vld.sshfl [vmem:[#allocation1 + $0x8] sm:$0xff pattern:$0x75316420]  ;;  %143 = vmatpush.msra.mxu1 %v118_v24 }
   0xa   :  { %v37_v4 = vsel %vm36_vm0, %v26_v2, 0.0  ;;  %v38_v5 = vsel %vm36_vm0, %v27_v3, 0.0  ;;  %v30_v7 = vld.sshfl [vmem:[#allocation1 + $0x10] sm:$0xff pattern:$0x75316420] }
   0xb   :  { %v39_v6 = vadd.f32 %v38_v5, %v37_v4  ;;  %v31_v8 = vld.sshfl [vmem:[#allocation1 + $0x18] sm:$0xff pattern:$0x75316420]  ;;  %v42_v9 = vsel %vm36_vm0, %v30_v7, 0.0  ;;  %144 = vmatpush.msra.mxu1 %v117_v25 }
   0xc   :  { %v43_v10 = vsel %vm36_vm0, %v31_v8, 0.0 }
   0xd   :  { %40 = vadd.xlane.f32.xlu0 %v39_v6  ;;  %v44_v11 = vadd.f32 %v43_v10, %v42_v9 }
  0x15   :  { %45 = vadd.xlane.f32.xlu0 %v44_v11 }
  0x80   :  { %v41_v13 = vpop.xlane.xlu0 %40 }
  0x81   :  { %v47_v16 = vmul.f32 0.00390625, %v41_v13 }
  0x83   :  { %v58_v19 = vperm.slane %v47_v16, %v57_v15 }
  0x88   :  { %v46_v17 = vpop.xlane.xlu0 %45 }
  0x89   :  { %v48_v18 = vmul.f32 0.00390625, %v46_v17 }
  0x8b   :  { %v59_v20 = vperm.slane %v48_v18, %v57_v15 }
  0x8d   :  { %v61_v21 = vsel %vm60_vm1, %v59_v20, %v58_v19 }
  0x8e   :  { %168 = vmatmul.msk.f32.vlgmr.msra.gmra.mxu0 %vm62_vm2, %v61_v21 }
 0x10b   :  { %v85_v27 = vpop.f32.mrf.mxu0 }
 0x10c   :  { %v86_v28 = vadd.f32 %v171_v26, %v85_v27 }
 0x10e   :  { %v89_v29 = vmul.f32 0.70710677, %v86_v28  ;;  %v88_v54 = vmul.f32 0.5, %v86_v28 }
 0x110   :  { %v90_v30 = vand.u32 2147483647, %v89_v29  ;;  %vm112_vm3 = vcmp.ge.f32.partialorder %v89_v29, 0.0 }
 0x112   :  { %v91_v31 = vmul.f32 0.3275911, %v90_v30  ;;  %v106_v37 = vsub.f32 0.0, %v90_v30 }
 0x114   :  { %v92_v32 = vadd.f32 1.0, %v91_v31  ;;  %v107_v40 = vmul.f32 %v106_v37, %v90_v30 }
 0x116   :  { %173 = vrcp.f32 %v92_v32  ;;  %v108_v43 = vmul.f32 1.442695, %v107_v40 }
 0x118   :  { %175 = vpow2.f32 %v108_v43 }
 0x11c   :  { %v174_v33 = vpop.eup %173 }
 0x11d   :  { %v94_v34 = vmul.f32 %v174_v33, %v92_v32 }
 0x11e   :  { %v176_v49 = vpop.eup %175 }
 0x11f   :  { %v95_v35 = vsub.f32 2.0, %v94_v34 }
 0x121   :  { %v96_v36 = vmul.f32 %v174_v33, %v95_v35 }
 0x123   :  { %v97_v38 = vmul.f32 1.0614054, %v96_v36 }
 0x125   :  { %v98_v39 = vadd.f32 -1.4531521, %v97_v38 }
 0x127   :  { %v99_v41 = vmul.f32 %v98_v39, %v96_v36 }
 0x129   :  { %v100_v42 = vadd.f32 1.4214138, %v99_v41 }
 0x12b   :  { %v101_v44 = vmul.f32 %v100_v42, %v96_v36 }
 0x12d   :  { %v102_v45 = vadd.f32 -0.28449672, %v101_v44 }
 0x12f   :  { %v103_v46 = vmul.f32 %v102_v45, %v96_v36 }
 0x131   :  { %v104_v47 = vadd.f32 0.2548296, %v103_v46 }
 0x133   :  { %v105_v48 = vmul.f32 %v104_v47, %v96_v36 }
 0x135   :  { %v110_v50 = vmul.f32 %v176_v49, %v105_v48 }
 0x137   :  { %v111_v51 = vsub.f32 1.0, %v110_v50 }
 0x139   :  { %v113_v52 = vsub.f32 0.0, %v111_v51 }
 0x13b   :  { %v114_v53 = vsel %vm112_vm3, %v111_v51, %v113_v52 }
 0x13c   :  { %v115_v55 = vadd.f32 1.0, %v114_v53 }
 0x13e   :  { %v116_v56 = vmul.f32 %v115_v55, %v88_v54 }
 0x140   :  { %169 = vmatmul.msk.f32.vlgmr.msra.gmra.mxu1 %vm125_vm4, %v116_v56 }
 0x1bd   :  { %v146_v58 = vpop.f32.mrf.mxu1 }
 0x1be   :  { %v147_v59 = vadd.f32 %v172_v57, %v146_v58 }
 0x1c0   :  { %150 = vst.msk [vmem:[#allocation2] sm:$0x3] %vm149_vm5, %v147_v59 }
 0x1c1   :  { %161 = dma.vmem_to_hbm [thread:$0]  %s157_s8, 32, %s159_s11, [#allocation3]  }
 0x1c2   :  { %201 = dma.done.wait [#allocation3], 32  }
 0x1c3   :  { %202 = vsyncadd [#allocation3], 4294967264 }
 0x1c4   :  { %166 = vsyncpa [#allocation3], 1 }

// kernel: tpu_custom_call.1
= control target key start
LH: loop header
LB: loop body
LE: loop exit
PB: predicated region body
PF: predicated region fallthrough
CT: control target
= control target key end

     0   :  { %s264_s0 = inlined_call_operand.vmem [shape: f32[2,4,256], index: 0, kind: input, shape index: {}]   ;;  %s265_s1 = inlined_call_operand.vmem [shape: f32[4,32], index: 1, kind: input, shape index: {}]   ;;  %s266_s2 = inlined_call_operand.vmem [shape: f32[1,32], index: 2, kind: input, shape index: {}]   ;;  %s267_s3 = inlined_call_operand.vmem [shape: f32[32,16], index: 3, kind: input, shape index: {}]   ;;  %s268_s4 = inlined_call_operand.vmem [shape: f32[1,16], index: 4, kind: input, shape index: {}]   ;;  %s269_s5 = inlined_call_operand.hbm [shape: f32[2,16], index: 5, kind: output, shape index: {}]  }
   0x1   :  { %v21_v0 = vld [vmem:[%s264_s0] sm:$0xff]  ;;  %v22_v1 = vld [vmem:[%s264_s0 + $0x8] sm:$0xff] }
   0x2   :  { %25 = vst [vmem:[#allocation1] ss:$2 sm:$0xff] %v21_v0 }
   0x3   :  { %10 = vsyncpa [#allocation3], 0  ;;  %29 = vst [vmem:[#allocation1 + $0x10] ss:$2 sm:$0xff] %v22_v1  ;;  %vm36_vm0 = vcmask 1043456   ;;  %v56_v14 = vlaneseq  ;;  %vm60_vm1 = vcmask 1041409  }
   0x4   :  { %v49_v12 = vld [vmem:[%s265_s1] sm:$0xf]  ;;  %vm62_vm2 = vcmask 31744   ;;  %v120_v22 = vld [vmem:[%s267_s3 + $0x18] sm:$0xff]  ;;  %v119_v23 = vld [vmem:[%s267_s3 + $0x10] sm:$0xff]  ;;  %vm125_vm4 = vcmask 261120  }
   0x5   :  { %167 = vmatpush.msk.msra.mxu0 %vm36_vm0, %v49_v12  ;;  %v57_v15 = vand.u32 127, %v56_v14  ;;  %141 = vmatpush.msra.mxu1 %v120_v22  ;;  %v118_v24 = vld [vmem:[%s267_s3 + $0x8] sm:$0xff]  ;;  %v117_v25 = vld [vmem:[%s267_s3] sm:$0xff]  ;;  %s203_s7 = smov [#allocation2]   ;;  %s158_s11 = sshll.u32 %s269_s5, 4  ;;  %vm149_vm5 = vcmask 123904   ;;  %s159_s11 = int_to_ptr.hbm [resolvable:$true] %s158_s11 }
   0x6   :  { %v171_v26 = vld [vmem:[%s266_s2] ss:$0 sm:$0xff]  ;;  %s156_s8 = sshll.u32 %s203_s7, 4  ;;  %s157_s8 = int_to_ptr.vmem [resolvable:$true] %s156_s8 }
   0x7   :  { %142 = vmatpush.msra.mxu1 %v119_v23  ;;  %v172_v57 = vld [vmem:[%s268_s4] ss:$0 sm:$0xff] }
   0x9   :  { %v26_v2 = vld.sshfl [vmem:[#allocation1] sm:$0xff pattern:$0x75316420]  ;;  %v27_v3 = vld.sshfl [vmem:[#allocation1 + $0x8] sm:$0xff pattern:$0x75316420]  ;;  %143 = vmatpush.msra.mxu1 %v118_v24 }
   0xa   :  { %v37_v4 = vsel %vm36_vm0, %v26_v2, 0.0  ;;  %v38_v5 = vsel %vm36_vm0, %v27_v3, 0.0  ;;  %v30_v7 = vld.sshfl [vmem:[#allocation1 + $0x10] sm:$0xff pattern:$0x75316420] }
   0xb   :  { %v39_v6 = vadd.f32 %v38_v5, %v37_v4  ;;  %v31_v8 = vld.sshfl [vmem:[#allocation1 + $0x18] sm:$0xff pattern:$0x75316420]  ;;  %v42_v9 = vsel %vm36_vm0, %v30_v7, 0.0  ;;  %144 = vmatpush.msra.mxu1 %v117_v25 }
   0xc   :  { %v43_v10 = vsel %vm36_vm0, %v31_v8, 0.0 }
   0xd   :  { %40 = vadd.xlane.f32.xlu0 %v39_v6  ;;  %v44_v11 = vadd.f32 %v43_v10, %v42_v9 }
  0x15   :  { %45 = vadd.xlane.f32.xlu0 %v44_v11 }
  0x80   :  { %v41_v13 = vpop.xlane.xlu0 %40 }
  0x81   :  { %v47_v16 = vmul.f32 0.00390625, %v41_v13 }
  0x83   :  { %v58_v19 = vperm.slane %v47_v16, %v57_v15 }
  0x88   :  { %v46_v17 = vpop.xlane.xlu0 %45 }
  0x89   :  { %v48_v18 = vmul.f32 0.00390625, %v46_v17 }
  0x8b   :  { %v59_v20 = vperm.slane %v48_v18, %v57_v15 }
  0x8d   :  { %v61_v21 = vsel %vm60_vm1, %v59_v20, %v58_v19 }
  0x8e   :  { %168 = vmatmul.msk.f32.vlgmr.msra.gmra.mxu0 %vm62_vm2, %v61_v21 }
 0x10b   :  { %v85_v27 = vpop.f32.mrf.mxu0 }
 0x10c   :  { %v86_v28 = vadd.f32 %v171_v26, %v85_v27 }
 0x10e   :  { %v89_v29 = vmul.f32 0.70710677, %v86_v28  ;;  %v88_v54 = vmul.f32 0.5, %v86_v28 }
 0x110   :  { %v90_v30 = vand.u32 2147483647, %v89_v29  ;;  %vm112_vm3 = vcmp.ge.f32.partialorder %v89_v29, 0.0 }
 0x112   :  { %v91_v31 = vmul.f32 0.3275911, %v90_v30  ;;  %v106_v37 = vsub.f32 0.0, %v90_v30 }
 0x114   :  { %v92_v32 = vadd.f32 1.0, %v91_v31  ;;  %v107_v40 = vmul.f32 %v106_v37, %v90_v30 }
 0x116   :  { %173 = vrcp.f32 %v92_v32  ;;  %v108_v43 = vmul.f32 1.442695, %v107_v40 }
 0x118   :  { %175 = vpow2.f32 %v108_v43 }
 0x11c   :  { %v174_v33 = vpop.eup %173 }
 0x11d   :  { %v94_v34 = vmul.f32 %v174_v33, %v92_v32 }
 0x11e   :  { %v176_v49 = vpop.eup %175 }
 0x11f   :  { %v95_v35 = vsub.f32 2.0, %v94_v34 }
 0x121   :  { %v96_v36 = vmul.f32 %v174_v33, %v95_v35 }
 0x123   :  { %v97_v38 = vmul.f32 1.0614054, %v96_v36 }
 0x125   :  { %v98_v39 = vadd.f32 -1.4531521, %v97_v38 }
 0x127   :  { %v99_v41 = vmul.f32 %v98_v39, %v96_v36 }
 0x129   :  { %v100_v42 = vadd.f32 1.4214138, %v99_v41 }
 0x12b   :  { %v101_v44 = vmul.f32 %v100_v42, %v96_v36 }
 0x12d   :  { %v102_v45 = vadd.f32 -0.28449672, %v101_v44 }
 0x12f   :  { %v103_v46 = vmul.f32 %v102_v45, %v96_v36 }
 0x131   :  { %v104_v47 = vadd.f32 0.2548296, %v103_v46 }
 0x133   :  { %v105_v48 = vmul.f32 %v104_v47, %v96_v36 }
 0x135   :  { %v110_v50 = vmul.f32 %v176_v49, %v105_v48 }
 0x137   :  { %v111_v51 = vsub.f32 1.0, %v110_v50 }
 0x139   :  { %v113_v52 = vsub.f32 0.0, %v111_v51 }
 0x13b   :  { %v114_v53 = vsel %vm112_vm3, %v111_v51, %v113_v52 }
 0x13c   :  { %v115_v55 = vadd.f32 1.0, %v114_v53 }
 0x13e   :  { %v116_v56 = vmul.f32 %v115_v55, %v88_v54 }
 0x140   :  { %169 = vmatmul.msk.f32.vlgmr.msra.gmra.mxu1 %vm125_vm4, %v116_v56 }
 0x1bd   :  { %v146_v58 = vpop.f32.mrf.mxu1 }
 0x1be   :  { %v147_v59 = vadd.f32 %v172_v57, %v146_v58 }
 0x1c0   :  { %150 = vst.msk [vmem:[#allocation2] sm:$0x3] %vm149_vm5, %v147_v59 }
 0x1c1   :  { %161 = dma.vmem_to_hbm [thread:$0]  %s157_s8, 32, %s159_s11, [#allocation3]  }
 0x1c2   :  { %201 = dma.done.wait [#allocation3], 32  }
 0x1c3   :  { %202 = vsyncadd [#allocation3], 4294967264 }
 0x1c4   :  { %166 = vsyncpa [#allocation3], 1 }

</bundles_post_ra>
